<compile_context>
chip_gen: v6e
topology: v6e:2x2x1
jax: 0.10.0
libtpu: 0.0.40
codegen_flags: <defaults>
</compile_context>

<pallas_src>
import math
import functools

import jax
import jax.numpy as jnp
from jax import lax
from jax.experimental import pallas as pl
from jax.experimental.pallas import tpu as pltpu


# ----------------------------------------------------------------------------
# generation-aware sizing + capability probe
# ----------------------------------------------------------------------------
_VMEM_CAP = None


def _vmem_cap_bytes():
    global _VMEM_CAP
    if _VMEM_CAP is None:
        try:
            info = pltpu.get_tpu_info()
            _VMEM_CAP = int(getattr(info, "vmem_capacity_bytes", 0)) or (128 << 20)
        except Exception:
            _VMEM_CAP = 128 << 20
    return _VMEM_CAP


def _vmem_limit_bytes():
    # v7x: 64 MiB physical per TC -> leave headroom; v5e/v6e: 128 MiB -> larger scoped limit.
    return (28 << 20) if _vmem_cap_bytes() <= (64 << 20) else (48 << 20)


def _resident_weight_bytes():
    return (6 << 20) if _vmem_cap_bytes() <= (64 << 20) else (14 << 20)


def _cparams(*sem):
    return pltpu.CompilerParams(dimension_semantics=sem,
                                vmem_limit_bytes=_vmem_limit_bytes())


_BUFFERED1_OK = None


def _buffered1_supported():
    """Probe once whether pl.Buffered(1) (single-buffered constant blocks) lowers cleanly."""
    global _BUFFERED1_OK
    if _BUFFERED1_OK is not None:
        return _BUFFERED1_OK
    try:
        def _probe_kernel(x_ref, o_ref):
            o_ref[...] = x_ref[...]
        spec = pl.BlockSpec((8, 128), lambda i: (0, 0), pipeline_mode=pl.Buffered(1))
        out = pl.pallas_call(
            _probe_kernel, grid=(2,),
            in_specs=[spec],
            out_specs=pl.BlockSpec((8, 128), lambda i: (0, 0)),
            out_shape=jax.ShapeDtypeStruct((8, 128), jnp.float32),
        )(jnp.zeros((8, 128), jnp.float32))
        jax.block_until_ready(out)
        _BUFFERED1_OK = True
    except Exception:
        _BUFFERED1_OK = False
    return _BUFFERED1_OK


def _const_spec(shape, index_map):
    """BlockSpec for a block whose index_map is constant over the grid: single-buffer it."""
    if _buffered1_supported():
        return pl.BlockSpec(shape, index_map, pipeline_mode=pl.Buffered(1))
    return pl.BlockSpec(shape, index_map)


# ----------------------------------------------------------------------------
# tiling helpers (no wrapper-side pad/slice: tiles always divide the array)
# ----------------------------------------------------------------------------
def _divisor_row_tile(M, cap=512):
    """Largest multiple-of-8 divisor of M that is <= cap; falls back to a single full block."""
    best = None
    t = 8
    while t <= min(M, cap):
        if M % t == 0:
            best = t
        t += 8
    return best if best is not None else M


def _col_tile(K, N):
    if K * N * 2 <= _resident_weight_bytes():
        return N
    for tn in (1024, 512, 256, 128):
        if N % tn == 0:
            return tn
    return N


def _k_tile(K, tn):
    if K * max(tn, 128) * 2 <= (4 << 20):
        return K
    for tk in (2048, 1024, 512, 256, 128):
        if K % tk == 0:
            return tk
    return K


# ----------------------------------------------------------------------------
# in-kernel math helpers (f32)
# ----------------------------------------------------------------------------
def _layernorm_f32(x, g, b, eps):
    mean = jnp.mean(x, axis=-1, keepdims=True)
    var = jnp.mean((x - mean) ** 2, axis=-1, keepdims=True)
    return (x - mean) * lax.rsqrt(var + eps) * g + b


def _gelu_tanh(x):
    # tanh-form GELU (EUP tanh) instead of the erf polynomial; tiny numerical delta vs exact erf.
    c = 0.7978845608028654  # sqrt(2/pi)
    return 0.5 * x * (1.0 + jnp.tanh(c * (x + 0.044715 * x * x * x)))


# ----------------------------------------------------------------------------
# Pallas kernels
# ----------------------------------------------------------------------------
def _layernorm_kernel(x_ref, g_ref, b_ref, o_ref, *, eps):
    x = x_ref[...].astype(jnp.float32)
    o_ref[...] = _layernorm_f32(x, g_ref[...], b_ref[...], eps).astype(o_ref.dtype)


def layernorm(x, gamma, beta, eps=1e-6, out_dtype=jnp.float32):
    *lead, D = x.shape
    x2 = x.reshape(-1, D)
    M = x2.shape[0]
    tm = _divisor_row_tile(M, cap=512)
    out = pl.pallas_call(
        functools.partial(_layernorm_kernel, eps=eps),
        grid=(M // tm,),
        in_specs=[pl.BlockSpec((tm, D), lambda i: (i, 0)),
                  _const_spec((1, D), lambda i: (0, 0)),
                  _const_spec((1, D), lambda i: (0, 0))],
        out_specs=pl.BlockSpec((tm, D), lambda i: (i, 0)),
        out_shape=jax.ShapeDtypeStruct((M, D), out_dtype),
        compiler_params=_cparams("parallel"),
    )(x2, gamma, beta)
    return out.reshape(*lead, D)


def _linear_kernel(x_ref, w_ref, b_ref, o_ref, acc_ref):
    k = pl.program_id(2)

    @pl.when(k == 0)
    def _():
        acc_ref[...] = jnp.zeros_like(acc_ref)

    acc_ref[...] += jnp.dot(x_ref[...].astype(jnp.bfloat16), w_ref[...],
                            preferred_element_type=jnp.float32)

    @pl.when(k == pl.num_programs(2) - 1)
    def _():
        o_ref[...] = (acc_ref[...] + b_ref[...]).astype(o_ref.dtype)


def linear(x, w, b=None, out_dtype=jnp.float32):
    """y = x @ w + b (classifier head). Cast to bf16 inside the kernel; f32 accumulation."""
    *lead, K = x.shape
    N = w.shape[1]
    x2 = x.reshape(-1, K)
    M = x2.shape[0]
    tm = _divisor_row_tile(M, cap=512)
    tn = _col_tile(K, N)
    tk = _k_tile(K, tn)
    nj, ni, nk = N // tn, M // tm, K // tk
    b2 = b if b is not None else jnp.zeros((1, N), jnp.float32)
    w_const = (nj == 1 and nk == 1)
    wspec = (_const_spec((tk, tn), lambda j, i, k: (k, j)) if w_const
             else pl.BlockSpec((tk, tn), lambda j, i, k: (k, j)))
    bspec = (_const_spec((1, tn), lambda j, i, k: (0, j)) if nj == 1
             else pl.BlockSpec((1, tn), lambda j, i, k: (0, j)))
    out = pl.pallas_call(
        _linear_kernel,
        # weight-varying axis (cols) outermost so the weight block is resident across row tiles;
        # K reduction innermost with an f32 VMEM accumulator (degenerates to 1 step for small K).
        grid=(nj, ni, nk),
        in_specs=[pl.BlockSpec((tm, tk), lambda j, i, k: (i, k)), wspec, bspec],
        out_specs=pl.BlockSpec((tm, tn), lambda j, i, k: (i, j)),
        out_shape=jax.ShapeDtypeStruct((M, N), out_dtype),
        scratch_shapes=[pltpu.VMEM((tm, tn), jnp.float32)],
        compiler_params=_cparams("parallel", "parallel", "arbitrary"),
    )(x2, w, b2)
    return out.reshape(*lead, N)


def _attn_block_kernel(x_ref, g_ref, bt_ref, wq_ref, wk_ref, wv_ref,
                       bq_ref, bk_ref, bv_ref, wp_ref, bp_ref,
                       o_ref, ln_s, acc_ref, *, scale, eps):
    """One (batch, head) grid step of: out = x + proj(MHSA(LN1(x))).

    The head axis is a reduction: each step adds its head's contribution (o_h @ Wproj_h)
    into a resident f32 (T, D) accumulator; LN1(x) is computed once (h == 0) into VMEM scratch.
    """
    h = pl.program_id(1)

    @pl.when(h == 0)
    def _():
        xf = x_ref[0].astype(jnp.float32)
        ln_s[...] = _layernorm_f32(xf, g_ref[...], bt_ref[...], eps).astype(ln_s.dtype)
        acc_ref[...] = jnp.zeros_like(acc_ref)

    ln = ln_s[...]                                                        # (T, D) bf16
    q = jnp.dot(ln, wq_ref[0], preferred_element_type=jnp.float32) + bq_ref[0]
    k = jnp.dot(ln, wk_ref[0], preferred_element_type=jnp.float32) + bk_ref[0]
    v = jnp.dot(ln, wv_ref[0], preferred_element_type=jnp.float32) + bv_ref[0]

    # TODO(synk): tile K/V over T with an online-softmax accumulator (flash-style) for long
    # sequences; the per-head (T, T) f32 scores are held in VMEM here.
    s = lax.dot_general(q.astype(jnp.bfloat16), k.astype(jnp.bfloat16),
                        (((1,), (1,)), ((), ())),
                        preferred_element_type=jnp.float32) * scale        # (T, T)
    s = s - jnp.max(s, axis=-1, keepdims=True)
    p = jnp.exp(s)
    p = p * pl.reciprocal(jnp.sum(p, axis=-1, keepdims=True), approx=True)

    o_h = jnp.dot(p.astype(jnp.bfloat16), v.astype(jnp.bfloat16),
                  preferred_element_type=jnp.float32)                      # (T, Dh)
    acc_ref[...] += jnp.dot(o_h.astype(jnp.bfloat16), wp_ref[0],
                            preferred_element_type=jnp.float32)            # (T, D)

    @pl.when(h == pl.num_programs(1) - 1)
    def _():
        o_ref[0] = (x_ref[0].astype(jnp.float32) + acc_ref[...] + bp_ref[...]).astype(o_ref.dtype)


def attention_block(x, p, num_heads, scale, eps=1e-6):
    # TODO(synk): for v7x with B < 2, add a parallel q-row-tile grid axis so both TensorCores are fed.
    B, T, D = x.shape
    H = num_heads
    Dh = D // H
    return pl.pallas_call(
        functools.partial(_attn_block_kernel, scale=scale, eps=eps),
        grid=(B, H),
        in_specs=[
            pl.BlockSpec((1, T, D), lambda b, h: (b, 0, 0)),       # x (resident across heads)
            _const_spec((1, D), lambda b, h: (0, 0)),              # ln1 gamma
            _const_spec((1, D), lambda b, h: (0, 0)),              # ln1 beta
            pl.BlockSpec((1, D, Dh), lambda b, h: (h, 0, 0)),      # Wq per head
            pl.BlockSpec((1, D, Dh), lambda b, h: (h, 0, 0)),      # Wk per head
            pl.BlockSpec((1, D, Dh), lambda b, h: (h, 0, 0)),      # Wv per head
            pl.BlockSpec((1, 1, Dh), lambda b, h: (h, 0, 0)),      # bq per head
            pl.BlockSpec((1, 1, Dh), lambda b, h: (h, 0, 0)),      # bk per head
            pl.BlockSpec((1, 1, Dh), lambda b, h: (h, 0, 0)),      # bv per head
            pl.BlockSpec((1, Dh, D), lambda b, h: (h, 0, 0)),      # Wproj rows per head
            _const_spec((1, D), lambda b, h: (0, 0)),              # proj bias
        ],
        out_specs=pl.BlockSpec((1, T, D), lambda b, h: (b, 0, 0)),
        out_shape=jax.ShapeDtypeStruct((B, T, D), jnp.bfloat16),
        scratch_shapes=[pltpu.VMEM((T, D), jnp.bfloat16),          # LN1(x)
                        pltpu.VMEM((T, D), jnp.float32)],          # proj accumulator
        compiler_params=_cparams("parallel", "arbitrary"),
    )(x, p["ln1_g"], p["ln1_b"], p["wq"], p["wk"], p["wv"],
      p["bq"], p["bk"], p["bv"], p["wproj"], p["bproj"])


def _ln_mlp_kernel(x_ref, g_ref, b_ref, w1_ref, b1_ref, w2_ref, b2_ref, o_ref, *, eps):
    """Fused: out = x + fc2(gelu(fc1(LN2(x)))); the 4x hidden never leaves VMEM."""
    x = x_ref[...].astype(jnp.float32)
    h = _layernorm_f32(x, g_ref[...], b_ref[...], eps)
    a = jnp.dot(h.astype(jnp.bfloat16), w1_ref[...],
                preferred_element_type=jnp.float32) + b1_ref[...]
    a = _gelu_tanh(a)
    y = jnp.dot(a.astype(jnp.bfloat16), w2_ref[...],
                preferred_element_type=jnp.float32) + b2_ref[...]
    o_ref[...] = (x + y).astype(o_ref.dtype)


def ln_mlp_residual(x, p, eps=1e-6):
    B, T, D = x.shape
    hid = p["fc1_w"].shape[1]
    x2 = x.reshape(B * T, D)
    M = B * T
    tm = _divisor_row_tile(M, cap=256)   # f32 (tm, hid) hidden + bf16 weights must fit VMEM
    out = pl.pallas_call(
        functools.partial(_ln_mlp_kernel, eps=eps),
        grid=(M // tm,),
        in_specs=[
            pl.BlockSpec((tm, D), lambda i: (i, 0)),
            _const_spec((1, D), lambda i: (0, 0)),
            _const_spec((1, D), lambda i: (0, 0)),
            _const_spec((D, hid), lambda i: (0, 0)),    # fc1 weight: constant -> single-buffered
            _const_spec((1, hid), lambda i: (0, 0)),
            _const_spec((hid, D), lambda i: (0, 0)),    # fc2 weight: constant -> single-buffered
            _const_spec((1, D), lambda i: (0, 0)),
        ],
        out_specs=pl.BlockSpec((tm, D), lambda i: (i, 0)),
        out_shape=jax.ShapeDtypeStruct((M, D), jnp.bfloat16),
        compiler_params=_cparams("parallel"),
    )(x2, p["ln2_g"], p["ln2_b"], p["fc1_w"], p["fc1_b"], p["fc2_w"], p["fc2_b"])
    return out.reshape(B, T, D)


# ----------------------------------------------------------------------------
# parameters + forward (matches ChannelMaeDecoder semantics; drop rates 0, no layerscale)
# ----------------------------------------------------------------------------
def init_decoder_params(key, embed_dim, depth, num_heads, mlp_ratio=4.0, num_classes=0):
    D, H = embed_dim, num_heads
    Dh = D // H
    hid = int(D * mlp_ratio)
    keys = iter(jax.random.split(key, 4 * depth + 4))

    def xav(fi, fo):  # xavier_uniform, matching nn.init.xavier_uniform_ on the torch weight
        lim = math.sqrt(6.0 / (fi + fo))
        return jax.random.uniform(next(keys), (fi, fo), jnp.float32, -lim, lim)

    def zeros(n):
        return jnp.zeros((1, n), jnp.float32)

    def ones(n):
        return jnp.ones((1, n), jnp.float32)

    blocks = []
    for _ in range(depth):
        wqkv = xav(D, 3 * D)                       # (D_in, [q|k|v] heads-major)
        bqkv = jnp.zeros((3 * D,), jnp.float32)
        wproj = xav(D, D)
        blocks.append(dict(
            ln1_g=ones(D), ln1_b=zeros(D),
            wq=wqkv[:, 0 * D:1 * D].reshape(D, H, Dh).transpose(1, 0, 2).astype(jnp.bfloat16),
            wk=wqkv[:, 1 * D:2 * D].reshape(D, H, Dh).transpose(1, 0, 2).astype(jnp.bfloat16),
            wv=wqkv[:, 2 * D:3 * D].reshape(D, H, Dh).transpose(1, 0, 2).astype(jnp.bfloat16),
            bq=bqkv[0 * D:1 * D].reshape(H, 1, Dh),
            bk=bqkv[1 * D:2 * D].reshape(H, 1, Dh),
            bv=bqkv[2 * D:3 * D].reshape(H, 1, Dh),
            wproj=wproj.reshape(H, Dh, D).astype(jnp.bfloat16),
            bproj=zeros(D),
            ln2_g=ones(D), ln2_b=zeros(D),
            fc1_w=xav(D, hid).astype(jnp.bfloat16), fc1_b=zeros(hid),
            fc2_w=xav(hid, D).astype(jnp.bfloat16), fc2_b=zeros(D),
        ))
    params = dict(blocks=blocks, norm_g=ones(D), norm_b=zeros(D))
    if num_classes > 0:
        params["head_w"] = xav(D, num_classes).astype(jnp.bfloat16)
        params["head_b"] = zeros(num_classes)
    return params


def channel_mae_decoder_forward(params, x, num_heads, return_token_num=-1,
                                qk_scale=None, eps=1e-6):
    """x: (B, T, D). Mirrors ChannelMaeDecoder.forward / get_last_tokens (head=Identity if no head)."""
    D = x.shape[-1]
    scale = qk_scale if qk_scale is not None else (D // num_heads) ** -0.5

    for bp in params["blocks"]:
        x = attention_block(x, bp, num_heads, scale, eps)   # x + proj(MHSA(LN1 x)), bf16 out
        x = ln_mlp_residual(x, bp, eps)                      # x + MLP(LN2 x), bf16 out

    has_head = "head_w" in params

    def norm_head(t):
        y = layernorm(t, params["norm_g"], params["norm_b"], eps,
                      out_dtype=jnp.bfloat16 if has_head else jnp.float32)
        if has_head:
            y = linear(y, params["head_w"], params["head_b"])
        return y

    if return_token_num > 0:
        return norm_head(x[:, -return_token_num:])
    elif return_token_num == 0:
        return norm_head(x)[:, x.shape[1]:]
    else:
        return norm_head(x)


# ----------------------------------------------------------------------------
if __name__ == "__main__":
    key = jax.random.PRNGKey(0)
    kp, kx, kh = jax.random.split(key, 3)

    embed_dim, depth, num_heads, mlp_ratio = 128, 2, 4, 4.0
    B, T = 2, 16

    # default module config: num_classes=0 -> head = Identity
    params = init_decoder_params(kp, embed_dim, depth, num_heads, mlp_ratio, num_classes=0)
    x = jax.random.normal(kx, (B, T, embed_dim), jnp.float32)

    # forward(x) with return_token_num=-1 -> norm over all tokens, Identity head
    y = channel_mae_decoder_forward(params, x, num_heads)
    jax.block_until_ready(y)
    assert y.shape == (B, T, embed_dim), y.shape
    assert bool(jnp.all(jnp.isfinite(y)))

    # return_token_num > 0 -> last-N tokens sliced before norm/head
    y4 = channel_mae_decoder_forward(params, x, num_heads, return_token_num=4)
    jax.block_until_ready(y4)
    assert y4.shape == (B, 4, embed_dim), y4.shape
    assert bool(jnp.all(jnp.isfinite(y4)))

    # classifier-head variant (num_classes > 0 -> Linear head), exercises the linear kernel
    params_cls = init_decoder_params(kh, embed_dim, 1, num_heads, mlp_ratio, num_classes=16)
    yc = channel_mae_decoder_forward(params_cls, x, num_heads, return_token_num=4)
    jax.block_until_ready(yc)
    assert yc.shape == (B, 4, 16), yc.shape
    assert bool(jnp.all(jnp.isfinite(yc)))

    print("KERNEL_OK")
</pallas_src>

<mosaic_0001>
module attributes {stable_mosaic.version = 11 : i64} {
  func.func @_probe_kernel(%arg0: i32, %arg1: memref<8x128xf32, #tpu.memory_space<vmem>>, %arg2: memref<8x128xf32, #tpu.memory_space<vmem>>) attributes {dimension_semantics = [#tpu.dimension_semantics<arbitrary>], iteration_bounds = array<i64: 2>, scalar_prefetch = 0 : i64, scratch_operands = 0 : i64, tpu.core_type = #tpu.core_type<tc>, window_params = [{pipeline_mode = #tpu.pipeline_mode<synchronous>, transform_indices = @transform_0, window_bounds = array<i64: 8, 128>}, {pipeline_mode = #tpu.pipeline_mode<synchronous>, transform_indices = @transform_1, window_bounds = array<i64: 8, 128>}]} {
    %c0 = arith.constant 0 : index
    %c0_0 = arith.constant 0 : index
    %0 = vector.load %arg1[%c0, %c0_0] : memref<8x128xf32, #tpu.memory_space<vmem>>, vector<8x128xf32>
    %c0_1 = arith.constant 0 : index
    %c0_2 = arith.constant 0 : index
    %1 = vector.load %arg2[%c0_1, %c0_2] : memref<8x128xf32, #tpu.memory_space<vmem>>, vector<8x128xf32>
    tpu.vector_store %arg2[%c0_1, %c0_2], %0 {strides = array<i32>} : memref<8x128xf32, #tpu.memory_space<vmem>>, vector<8x128xf32>,
    return
  }
  func.func @transform_0(%arg0: i32) -> (i32, i32) {
    %c0_i32 = arith.constant 0 : i32
    %c0_i32_0 = arith.constant 0 : i32
    %c0_i32_1 = arith.constant 0 : i32
    return %c0_i32, %c0_i32_0 : i32, i32
  }
  func.func @transform_1(%arg0: i32) -> (i32, i32) {
    %c0_i32 = arith.constant 0 : i32
    %c0_i32_0 = arith.constant 0 : i32
    %c0_i32_1 = arith.constant 0 : i32
    return %c0_i32, %c0_i32_0 : i32, i32
  }
}

module attributes {stable_mosaic.version = 11 : i64} {
  func.func @_attn_block_kernel(%arg0: i32, %arg1: i32, %arg2: memref<1x16x128xf32, #tpu.memory_space<vmem>>, %arg3: memref<1x128xf32, #tpu.memory_space<vmem>>, %arg4: memref<1x128xf32, #tpu.memory_space<vmem>>, %arg5: memref<1x128x32xbf16, #tpu.memory_space<vmem>>, %arg6: memref<1x128x32xbf16, #tpu.memory_space<vmem>>, %arg7: memref<1x128x32xbf16, #tpu.memory_space<vmem>>, %arg8: memref<1x1x32xf32, #tpu.memory_space<vmem>>, %arg9: memref<1x1x32xf32, #tpu.memory_space<vmem>>, %arg10: memref<1x1x32xf32, #tpu.memory_space<vmem>>, %arg11: memref<1x32x128xbf16, #tpu.memory_space<vmem>>, %arg12: memref<1x128xf32, #tpu.memory_space<vmem>>, %arg13: memref<1x16x128xbf16, #tpu.memory_space<vmem>>, %arg14: memref<16x128xbf16, #tpu.memory_space<vmem>>, %arg15: memref<16x128xf32, #tpu.memory_space<vmem>>) attributes {dimension_semantics = [#tpu.dimension_semantics<parallel>, #tpu.dimension_semantics<arbitrary>], iteration_bounds = array<i64: 2, 4>, scalar_prefetch = 0 : i64, scratch_operands = 2 : i64, tpu.core_type = #tpu.core_type<tc>, window_params = [{transform_indices = @transform_0, window_bounds = array<i64: 1, 16, 128>}, {pipeline_mode = #tpu.pipeline_mode<synchronous>, transform_indices = @transform_1, window_bounds = array<i64: 1, 128>}, {pipeline_mode = #tpu.pipeline_mode<synchronous>, transform_indices = @transform_2, window_bounds = array<i64: 1, 128>}, {transform_indices = @transform_3, window_bounds = array<i64: 1, 128, 32>}, {transform_indices = @transform_4, window_bounds = array<i64: 1, 128, 32>}, {transform_indices = @transform_5, window_bounds = array<i64: 1, 128, 32>}, {transform_indices = @transform_6, window_bounds = array<i64: 1, 1, 32>}, {transform_indices = @transform_7, window_bounds = array<i64: 1, 1, 32>}, {transform_indices = @transform_8, window_bounds = array<i64: 1, 1, 32>}, {transform_indices = @transform_9, window_bounds = array<i64: 1, 32, 128>}, {pipeline_mode = #tpu.pipeline_mode<synchronous>, transform_indices = @transform_10, window_bounds = array<i64: 1, 128>}, {transform_indices = @transform_11, window_bounds = array<i64: 1, 16, 128>}]} {
    %c0_i32 = arith.constant 0 : i32
    %0 = arith.cmpi eq, %arg1, %c0_i32 : i32
    %1 = arith.extui %0 : i1 to i32
    %c0_i32_0 = arith.constant 0 : i32
    %2 = arith.cmpi ne, %1, %c0_i32_0 : i32
    scf.if %2 {
      %c0_36 = arith.constant 0 : index
      %c0_37 = arith.constant 0 : index
      %c0_38 = arith.constant 0 : index
      %53 = vector.load %arg2[%c0_36, %c0_37, %c0_38] : memref<1x16x128xf32, #tpu.memory_space<vmem>>, vector<1x16x128xf32>
      %54 = vector.shape_cast %53 : vector<1x16x128xf32> to vector<16x128xf32>
      %c0_39 = arith.constant 0 : index
      %c0_40 = arith.constant 0 : index
      %55 = vector.load %arg3[%c0_39, %c0_40] : memref<1x128xf32, #tpu.memory_space<vmem>>, vector<1x128xf32>
      %c0_41 = arith.constant 0 : index
      %c0_42 = arith.constant 0 : index
      %56 = vector.load %arg4[%c0_41, %c0_42] : memref<1x128xf32, #tpu.memory_space<vmem>>, vector<1x128xf32>
      %cst_43 = arith.constant dense<0.000000e+00> : vector<16xf32>
      %57 = vector.multi_reduction <add>, %54, %cst_43 [1] : vector<16x128xf32> to vector<16xf32>
      %58 = vector.shape_cast %57 : vector<16xf32> to vector<16x1xf32>
      %cst_44 = arith.constant 1.280000e+02 : f32
      %59 = vector.broadcast %cst_44 : f32 to vector<16x1xf32>
      %60 = arith.divf %58, %59 : vector<16x1xf32>
      %61 = vector.broadcast %60 : vector<16x1xf32> to vector<16x128xf32>
      %62 = arith.subf %54, %61 : vector<16x128xf32>
      %63 = arith.mulf %62, %62 : vector<16x128xf32>
      %cst_45 = arith.constant dense<0.000000e+00> : vector<16xf32>
      %64 = vector.multi_reduction <add>, %63, %cst_45 [1] : vector<16x128xf32> to vector<16xf32>
      %65 = vector.shape_cast %64 : vector<16xf32> to vector<16x1xf32>
      %cst_46 = arith.constant 1.280000e+02 : f32
      %66 = vector.broadcast %cst_46 : f32 to vector<16x1xf32>
      %67 = arith.divf %65, %66 : vector<16x1xf32>
      %68 = vector.broadcast %60 : vector<16x1xf32> to vector<16x128xf32>
      %69 = arith.subf %54, %68 : vector<16x128xf32>
      %cst_47 = arith.constant 9.99999997E-7 : f32
      %70 = vector.broadcast %cst_47 : f32 to vector<16x1xf32>
      %71 = arith.addf %67, %70 : vector<16x1xf32>
      %72 = math.rsqrt %71 : vector<16x1xf32>
      %73 = vector.broadcast %72 : vector<16x1xf32> to vector<16x128xf32>
      %74 = arith.mulf %69, %73 : vector<16x128xf32>
      %75 = vector.broadcast %55 : vector<1x128xf32> to vector<16x128xf32>
      %76 = arith.mulf %74, %75 : vector<16x128xf32>
      %77 = vector.broadcast %56 : vector<1x128xf32> to vector<16x128xf32>
      %78 = arith.addf %76, %77 : vector<16x128xf32>
      %79 = arith.truncf %78 : vector<16x128xf32> to vector<16x128xbf16>
      %c0_48 = arith.constant 0 : index
      %c0_49 = arith.constant 0 : index
      %80 = vector.load %arg14[%c0_48, %c0_49] : memref<16x128xbf16, #tpu.memory_space<vmem>>, vector<16x128xbf16>
      tpu.vector_store %arg14[%c0_48, %c0_49], %79 {strides = array<i32>} : memref<16x128xbf16, #tpu.memory_space<vmem>>, vector<16x128xbf16>,
      %cst_50 = arith.constant 0.000000e+00 : f32
      %81 = vector.broadcast %cst_50 : f32 to vector<16x128xf32>
      %c0_51 = arith.constant 0 : index
      %c0_52 = arith.constant 0 : index
      %82 = vector.load %arg15[%c0_51, %c0_52] : memref<16x128xf32, #tpu.memory_space<vmem>>, vector<16x128xf32>
      tpu.vector_store %arg15[%c0_51, %c0_52], %81 {strides = array<i32>} : memref<16x128xf32, #tpu.memory_space<vmem>>, vector<16x128xf32>,
    } else {
    }
    %c0 = arith.constant 0 : index
    %c0_1 = arith.constant 0 : index
    %3 = vector.load %arg14[%c0, %c0_1] : memref<16x128xbf16, #tpu.memory_space<vmem>>, vector<16x128xbf16>
    %c0_2 = arith.constant 0 : index
    %c0_3 = arith.constant 0 : index
    %c0_4 = arith.constant 0 : index
    %4 = vector.load %arg5[%c0_2, %c0_3, %c0_4] : memref<1x128x32xbf16, #tpu.memory_space<vmem>>, vector<1x128x32xbf16>
    %5 = vector.shape_cast %4 : vector<1x128x32xbf16> to vector<128x32xbf16>
    %cst = arith.constant dense<0.000000e+00> : vector<16x32xf32>
    %6 = tpu.matmul %3, %5, %cst {dimension_numbers = #tpu.dot_dimension_numbers<[1], [0], [0], [1], [0, 0, 1, 1], [], []>} : vector<16x128xbf16>, vector<128x32xbf16>, vector<16x32xf32> -> vector<16x32xf32>
    %c0_5 = arith.constant 0 : index
    %c0_6 = arith.constant 0 : index
    %c0_7 = arith.constant 0 : index
    %7 = vector.load %arg8[%c0_5, %c0_6, %c0_7] : memref<1x1x32xf32, #tpu.memory_space<vmem>>, vector<1x1x32xf32>
    %8 = vector.shape_cast %7 : vector<1x1x32xf32> to vector<1x32xf32>
    %9 = vector.broadcast %8 : vector<1x32xf32> to vector<16x32xf32>
    %10 = arith.addf %6, %9 : vector<16x32xf32>
    %c0_8 = arith.constant 0 : index
    %c0_9 = arith.constant 0 : index
    %c0_10 = arith.constant 0 : index
    %11 = vector.load %arg6[%c0_8, %c0_9, %c0_10] : memref<1x128x32xbf16, #tpu.memory_space<vmem>>, vector<1x128x32xbf16>
    %12 = vector.shape_cast %11 : vector<1x128x32xbf16> to vector<128x32xbf16>
    %cst_11 = arith.constant dense<0.000000e+00> : vector<16x32xf32>
    %13 = tpu.matmul %3, %12, %cst_11 {dimension_numbers = #tpu.dot_dimension_numbers<[1], [0], [0], [1], [0, 0, 1, 1], [], []>} : vector<16x128xbf16>, vector<128x32xbf16>, vector<16x32xf32> -> vector<16x32xf32>
    %c0_12 = arith.constant 0 : index
    %c0_13 = arith.constant 0 : index
    %c0_14 = arith.constant 0 : index
    %14 = vector.load %arg9[%c0_12, %c0_13, %c0_14] : memref<1x1x32xf32, #tpu.memory_space<vmem>>, vector<1x1x32xf32>
    %15 = vector.shape_cast %14 : vector<1x1x32xf32> to vector<1x32xf32>
    %16 = vector.broadcast %15 : vector<1x32xf32> to vector<16x32xf32>
    %17 = arith.addf %13, %16 : vector<16x32xf32>
    %c0_15 = arith.constant 0 : index
    %c0_16 = arith.constant 0 : index
    %c0_17 = arith.constant 0 : index
    %18 = vector.load %arg7[%c0_15, %c0_16, %c0_17] : memref<1x128x32xbf16, #tpu.memory_space<vmem>>, vector<1x128x32xbf16>
    %19 = vector.shape_cast %18 : vector<1x128x32xbf16> to vector<128x32xbf16>
    %cst_18 = arith.constant dense<0.000000e+00> : vector<16x32xf32>
    %20 = tpu.matmul %3, %19, %cst_18 {dimension_numbers = #tpu.dot_dimension_numbers<[1], [0], [0], [1], [0, 0, 1, 1], [], []>} : vector<16x128xbf16>, vector<128x32xbf16>, vector<16x32xf32> -> vector<16x32xf32>
    %c0_19 = arith.constant 0 : index
    %c0_20 = arith.constant 0 : index
    %c0_21 = arith.constant 0 : index
    %21 = vector.load %arg10[%c0_19, %c0_20, %c0_21] : memref<1x1x32xf32, #tpu.memory_space<vmem>>, vector<1x1x32xf32>
    %22 = vector.shape_cast %21 : vector<1x1x32xf32> to vector<1x32xf32>
    %23 = vector.broadcast %22 : vector<1x32xf32> to vector<16x32xf32>
    %24 = arith.addf %20, %23 : vector<16x32xf32>
    %25 = arith.truncf %10 : vector<16x32xf32> to vector<16x32xbf16>
    %26 = arith.truncf %17 : vector<16x32xf32> to vector<16x32xbf16>
    %cst_22 = arith.constant dense<0.000000e+00> : vector<16x16xf32>
    %27 = tpu.matmul %25, %26, %cst_22 {dimension_numbers = #tpu.dot_dimension_numbers<[1], [1], [0], [0], [0, 0, 1, 0], [], []>} : vector<16x32xbf16>, vector<16x32xbf16>, vector<16x16xf32> -> vector<16x16xf32>
    %cst_23 = arith.constant 0.176776692 : f32
    %28 = vector.broadcast %cst_23 : f32 to vector<16x16xf32>
    %29 = arith.mulf %27, %28 : vector<16x16xf32>
    %cst_24 = arith.constant dense<0xFF800000> : vector<16xf32>
    %30 = vector.multi_reduction <maximumf>, %29, %cst_24 [1] : vector<16x16xf32> to vector<16xf32>
    %31 = vector.shape_cast %30 : vector<16xf32> to vector<16x1xf32>
    %32 = vector.broadcast %31 : vector<16x1xf32> to vector<16x16xf32>
    %33 = arith.subf %29, %32 : vector<16x16xf32>
    %34 = math.exp %33 : vector<16x16xf32>
    %cst_25 = arith.constant dense<0.000000e+00> : vector<16xf32>
    %35 = vector.multi_reduction <add>, %34, %cst_25 [1] : vector<16x16xf32> to vector<16xf32>
    %36 = vector.shape_cast %35 : vector<16xf32> to vector<16x1xf32>
    %37 = tpu.reciprocal %36 {approx = true} : vector<16x1xf32> -> vector<16x1xf32>
    %38 = vector.broadcast %37 : vector<16x1xf32> to vector<16x16xf32>
    %39 = arith.mulf %34, %38 : vector<16x16xf32>
    %40 = arith.truncf %39 : vector<16x16xf32> to vector<16x16xbf16>
    %41 = arith.truncf %24 : vector<16x32xf32> to vector<16x32xbf16>
    %cst_26 = arith.constant dense<0.000000e+00> : vector<16x32xf32>
    %42 = tpu.matmul %40, %41, %cst_26 {dimension_numbers = #tpu.dot_dimension_numbers<[1], [0], [0], [1], [0, 0, 1, 1], [], []>} : vector<16x16xbf16>, vector<16x32xbf16>, vector<16x32xf32> -> vector<16x32xf32>
    %c0_27 = arith.constant 0 : index
    %c0_28 = arith.constant 0 : index
    %43 = vector.load %arg15[%c0_27, %c0_28] : memref<16x128xf32, #tpu.memory_space<vmem>>, vector<16x128xf32>
    %44 = arith.truncf %42 : vector<16x32xf32> to vector<16x32xbf16>
    %c0_29 = arith.constant 0 : index
    %c0_30 = arith.constant 0 : index
    %c0_31 = arith.constant 0 : index
    %45 = vector.load %arg11[%c0_29, %c0_30, %c0_31] : memref<1x32x128xbf16, #tpu.memory_space<vmem>>, vector<1x32x128xbf16>
    %46 = vector.shape_cast %45 : vector<1x32x128xbf16> to vector<32x128xbf16>
    %cst_32 = arith.constant dense<0.000000e+00> : vector<16x128xf32>
    %47 = tpu.matmul %44, %46, %cst_32 {dimension_numbers = #tpu.dot_dimension_numbers<[1], [0], [0], [1], [0, 0, 1, 1], [], []>} : vector<16x32xbf16>, vector<32x128xbf16>, vector<16x128xf32> -> vector<16x128xf32>
    %48 = arith.addf %43, %47 : vector<16x128xf32>
    %c0_33 = arith.constant 0 : index
    %c0_34 = arith.constant 0 : index
    %49 = vector.load %arg15[%c0_33, %c0_34] : memref<16x128xf32, #tpu.memory_space<vmem>>, vector<16x128xf32>
    tpu.vector_store %arg15[%c0_33, %c0_34], %48 {strides = array<i32>} : memref<16x128xf32, #tpu.memory_space<vmem>>, vector<16x128xf32>,
    %c3_i32 = arith.constant 3 : i32
    %50 = arith.cmpi eq, %arg1, %c3_i32 : i32
    %51 = arith.extui %50 : i1 to i32
    %c0_i32_35 = arith.constant 0 : i32
    %52 = arith.cmpi ne, %51, %c0_i32_35 : i32
    scf.if %52 {
      %c0_36 = arith.constant 0 : index
      %c0_37 = arith.constant 0 : index
      %c0_38 = arith.constant 0 : index
      %53 = vector.load %arg2[%c0_36, %c0_37, %c0_38] : memref<1x16x128xf32, #tpu.memory_space<vmem>>, vector<1x16x128xf32>
      %54 = vector.shape_cast %53 : vector<1x16x128xf32> to vector<16x128xf32>
      %c0_39 = arith.constant 0 : index
      %c0_40 = arith.constant 0 : index
      %55 = vector.load %arg15[%c0_39, %c0_40] : memref<16x128xf32, #tpu.memory_space<vmem>>, vector<16x128xf32>
      %56 = arith.addf %54, %55 : vector<16x128xf32>
      %c0_41 = arith.constant 0 : index
      %c0_42 = arith.constant 0 : index
      %57 = vector.load %arg12[%c0_41, %c0_42] : memref<1x128xf32, #tpu.memory_space<vmem>>, vector<1x128xf32>
      %58 = vector.broadcast %57 : vector<1x128xf32> to vector<16x128xf32>
      %59 = arith.addf %56, %58 : vector<16x128xf32>
      %60 = arith.truncf %59 : vector<16x128xf32> to vector<16x128xbf16>
      %c0_43 = arith.constant 0 : index
      %c0_44 = arith.constant 0 : index
      %c0_45 = arith.constant 0 : index
      %61 = vector.load %arg13[%c0_43, %c0_44, %c0_45] : memref<1x16x128xbf16, #tpu.memory_space<vmem>>, vector<1x16x128xbf16>
      %62 = vector.shape_cast %61 : vector<1x16x128xbf16> to vector<16x128xbf16>
      %63 = vector.shape_cast %60 : vector<16x128xbf16> to vector<1x16x128xbf16>
      tpu.vector_store %arg13[%c0_43, %c0_44, %c0_45], %63 {strides = array<i32>} : memref<1x16x128xbf16, #tpu.memory_space<vmem>>, vector<1x16x128xbf16>,
    } else {
    }
    return
  }
  func.func @transform_0(%arg0: i32, %arg1: i32) -> (i32, i32, i32) {
    %c0_i32 = arith.constant 0 : i32
    %c0_i32_0 = arith.constant 0 : i32
    %c0_i32_1 = arith.constant 0 : i32
    return %arg0, %c0_i32, %c0_i32_0 : i32, i32, i32
  }
  func.func @transform_1(%arg0: i32, %arg1: i32) -> (i32, i32) {
    %c0_i32 = arith.constant 0 : i32
    %c0_i32_0 = arith.constant 0 : i32
    %c0_i32_1 = arith.constant 0 : i32
    return %c0_i32, %c0_i32_0 : i32, i32
  }
  func.func @transform_2(%arg0: i32, %arg1: i32) -> (i32, i32) {
    %c0_i32 = arith.constant 0 : i32
    %c0_i32_0 = arith.constant 0 : i32
    %c0_i32_1 = arith.constant 0 : i32
    return %c0_i32, %c0_i32_0 : i32, i32
  }
  func.func @transform_3(%arg0: i32, %arg1: i32) -> (i32, i32, i32) {
    %c0_i32 = arith.constant 0 : i32
    %c0_i32_0 = arith.constant 0 : i32
    %c0_i32_1 = arith.constant 0 : i32
    return %arg1, %c0_i32, %c0_i32_0 : i32, i32, i32
  }
  func.func @transform_4(%arg0: i32, %arg1: i32) -> (i32, i32, i32) {
    %c0_i32 = arith.constant 0 : i32
    %c0_i32_0 = arith.constant 0 : i32
    %c0_i32_1 = arith.constant 0 : i32
    return %arg1, %c0_i32, %c0_i32_0 : i32, i32, i32
  }
  func.func @transform_5(%arg0: i32, %arg1: i32) -> (i32, i32, i32) {
    %c0_i32 = arith.constant 0 : i32
    %c0_i32_0 = arith.constant 0 : i32
    %c0_i32_1 = arith.constant 0 : i32
    return %arg1, %c0_i32, %c0_i32_0 : i32, i32, i32
  }
  func.func @transform_6(%arg0: i32, %arg1: i32) -> (i32, i32, i32) {
    %c0_i32 = arith.constant 0 : i32
    %c0_i32_0 = arith.constant 0 : i32
    %c0_i32_1 = arith.constant 0 : i32
    return %arg1, %c0_i32, %c0_i32_0 : i32, i32, i32
  }
  func.func @transform_7(%arg0: i32, %arg1: i32) -> (i32, i32, i32) {
    %c0_i32 = arith.constant 0 : i32
    %c0_i32_0 = arith.constant 0 : i32
    %c0_i32_1 = arith.constant 0 : i32
    return %arg1, %c0_i32, %c0_i32_0 : i32, i32, i32
  }
  func.func @transform_8(%arg0: i32, %arg1: i32) -> (i32, i32, i32) {
    %c0_i32 = arith.constant 0 : i32
    %c0_i32_0 = arith.constant 0 : i32
    %c0_i32_1 = arith.constant 0 : i32
    return %arg1, %c0_i32, %c0_i32_0 : i32, i32, i32
  }
  func.func @transform_9(%arg0: i32, %arg1: i32) -> (i32, i32, i32) {
    %c0_i32 = arith.constant 0 : i32
    %c0_i32_0 = arith.constant 0 : i32
    %c0_i32_1 = arith.constant 0 : i32
    return %arg1, %c0_i32, %c0_i32_0 : i32, i32, i32
  }
  func.func @transform_10(%arg0: i32, %arg1: i32) -> (i32, i32) {
    %c0_i32 = arith.constant 0 : i32
    %c0_i32_0 = arith.constant 0 : i32
    %c0_i32_1 = arith.constant 0 : i32
    return %c0_i32, %c0_i32_0 : i32, i32
  }
  func.func @transform_11(%arg0: i32, %arg1: i32) -> (i32, i32, i32) {
    %c0_i32 = arith.constant 0 : i32
    %c0_i32_0 = arith.constant 0 : i32
    %c0_i32_1 = arith.constant 0 : i32
    return %arg0, %c0_i32, %c0_i32_0 : i32, i32, i32
  }
}

</mosaic_0001>

<bundles_post_ra>
// kernel: tpu_custom_call.1
= control target key start
LH: loop header
LB: loop body
LE: loop exit
PB: predicated region body
PF: predicated region fallthrough
CT: control target
= control target key end

     0   :  { %6 = vsyncpa [#allocation3], 0  ;;  %s304_s0 = inlined_call_operand.hbm [shape: f32[8,128], index: 0, kind: input, shape index: {}]   ;;  %s305_s1 = inlined_call_operand.hbm [shape: f32[8,128], index: 1, kind: output, shape index: {}]  }
   0x1   :  { %7 = vsyncpa [#allocation4], 0  ;;  %s257_s6 = smov 0  }
   0x2 LB: > { %s144_s7 = sadd.s32 4294967295, %s243_s6   ;;  %p145_p0 = scmp.ge.s32.totalorder %s243_s6, 1  ;;  %s243_s6 = sphi %s257_s6, %s13_s6  }
   0x3   : > { %p60_p1 = scmp.lt.s32.totalorder %s243_s6, 3  ;;  %p269_p3 = scmp.eq.s32.totalorder %s144_s7, 0 }
   0x4   : > { %s245_s10 = smov [#allocation2]  }
   0x5   : > { %p265_p2 = pnand %p145_p0, %p60_p1  ;;  %s73_s11 = sshll.u32 %s245_s10, 4  ;;  %s74_s11 = int_to_ptr.vmem [resolvable:$true] %s73_s11 }
   0x6   : > { %s190_s12 = scalar_lea.vmem %s74_s11, 128  ;;  %p198_p10 = scmp.lt.s32.totalorder %s74_s11, %s74_s11 }
   0x7   : > { %p161_p4 = pneg %p265_p2  ;;  %p191_p7 = scmp.ne.s32.totalorder %s74_s11, %s190_s12 }
   0x8   : > { %p199_p11 = scmp.lt.s32.totalorder %s190_s12, %s190_s12 }
   0x9   : > { %p162_p5 = pnand %p269_p3, %p161_p4 }
   0xa   : > { %p200_p12 = por %p199_p11, %p198_p10 }
   0xb   : > { %p181_p6 = pneg %p162_p5 }
   0xd   : > { %p193_p8 = pnand %p191_p7, %p181_p6 }
   0xf   : > { %p194_p9 = pneg %p193_p8 }
  0x11   : > { %p201_p13 = pnand %p200_p12, %p194_p9 }
  0x13   : > { %204 = shalt.err (!%p201_p13)
}
  0x14   : > { %164 = dma.hbm_to_vmem [thread:$0]  (!%p162_p5), %s304_s0, 128, %s74_s11, [#allocation3]  }
  0x15   : > { %86 = sbr.rel (%p265_p2) target bundleno = 42 (0x2a), region = 24 }
  0x1a   : > { %234 = dma.done.wait (%p269_p3), [#allocation3], 128  }
  0x1b   : > { %236 = vsyncadd (%p269_p3), [#allocation3], 4294967168  ;;  %s246_s15 = smov [#allocation5]   ;;  %p286_p0 = scmp.eq.s32.totalorder %s144_s7, 1  ;;  %v96_v0 = vld [vmem:[#allocation2] sm:$0xff] }
  0x1c   : > { %s105_s16 = sshll.u32 %s246_s15, 4  ;;  %97 = vst [vmem:[#allocation5] sm:$0xff] %v96_v0  ;;  %s106_s16 = int_to_ptr.vmem [resolvable:$true] %s105_s16 }
  0x1d   : > { %s205_s18 = scalar_lea.vmem %s106_s16, 128  ;;  %p212_p5 = scmp.lt.s32.totalorder %s106_s16, %s106_s16 }
  0x1e   : > { %p206_p1 = scmp.ne.s32.totalorder %s106_s16, %s205_s18  ;;  %p213_p6 = scmp.lt.s32.totalorder %s205_s18, %s205_s18 }
  0x20   : > { %p207_p2 = pnand %p206_p1, %p286_p0  ;;  %p214_p7 = por %p213_p6, %p212_p5 }
  0x22   : > { %p208_p4 = pneg %p207_p2 }
  0x24   : > { %p215_p8 = pnand %p214_p7, %p208_p4 }
  0x26   : > { %218 = shalt.err (!%p215_p8)
}
  0x27   : > { %158 = dma.vmem_to_hbm [thread:$0]  (%p286_p0), %s106_s16, 128, %s305_s1, [#allocation4]  }
  0x28   : > { %238 = dma.done.wait (%p286_p0), [#allocation4], 128  }
  0x29   : > { %240 = vsyncadd (%p286_p0), [#allocation4], 4294967168 }
  0x2a PF: > { %s13_s6 = sadd.s32 1, %s243_s6  }
  0x2b   : > { %p10_p3 = scmp.ge.s32.totalorder %s13_s6, 4  }
  0x2d   :  { %12 = sbr.rel (!%p10_p3) target bundleno = 2 (0x2), region = 53 }
  0x32   :  { %118 = vsyncpa [#allocation3], 1 }
  0x33   :  { %120 = vsyncpa [#allocation3 + $0x1], 1 }
  0x34   :  { %121 = vsyncpa [#allocation4], 1 }
  0x35   :  { %123 = vsyncpa [#allocation4 + $0x1], 1 }

// kernel: tpu_custom_call.1
= control target key start
LH: loop header
LB: loop body
LE: loop exit
PB: predicated region body
PF: predicated region fallthrough
CT: control target
= control target key end

     0   :  { %s2063_s0 = inlined_call_operand.vmem [shape: f32[2,16,128], index: 0, kind: input, shape index: {}]   ;;  %s2064_s1 = inlined_call_operand.vmem [shape: f32[1,128], index: 1, kind: input, shape index: {}]   ;;  %s2065_s2 = inlined_call_operand.vmem [shape: f32[1,128], index: 2, kind: input, shape index: {}]   ;;  %s2066_s3 = inlined_call_operand.vmem [shape: bf16[4,128,32], index: 3, kind: input, shape index: {}]   ;;  %s2067_s4 = inlined_call_operand.vmem [shape: bf16[4,128,32], index: 4, kind: input, shape index: {}]   ;;  %s2068_s5 = inlined_call_operand.vmem [shape: bf16[4,128,32], index: 5, kind: input, shape index: {}]   ;;  %s2069_s6 = inlined_call_operand.vmem [shape: f32[4,1,32], index: 6, kind: input, shape index: {}]   ;;  %s2070_s7 = inlined_call_operand.vmem [shape: f32[4,1,32], index: 7, kind: input, shape index: {}]   ;;  %s2071_s8 = inlined_call_operand.vmem [shape: f32[4,1,32], index: 8, kind: input, shape index: {}]   ;;  %s2072_s9 = inlined_call_operand.vmem [shape: bf16[4,32,128], index: 9, kind: input, shape index: {}]   ;;  %s2073_s10 = inlined_call_operand.vmem [shape: f32[1,128], index: 10, kind: input, shape index: {}]   ;;  %s2074_s11 = inlined_call_operand.hbm [shape: bf16[2,16,128], index: 11, kind: output, shape index: {}]  }
   0x1   :  { %2089 = sst [smem:[#allocation19_spill]] %s2063_s0 }
   0x2   :  { %2090 = sst [smem:[#allocation20_spill]] %s2066_s3 }
   0x3   :  { %2091 = sst [smem:[#allocation21_spill]] %s2067_s4 }
   0x4   :  { %2092 = sst [smem:[#allocation22_spill]] %s2074_s11 }
   0x5   :  { %16 = vsyncpa [#allocation5], 0 }
   0x6   :  { %18 = vsyncpa [#allocation5 + $0x1], 0  ;;  %s1774_s17 = smov 0   ;;  %s1776_s18 = smov 0  }
   0x7   :  { %s1778_s19 = smov 0   ;;  %s1780_s20 = smov 0  }
   0x8   :  { %s1782_s21 = smov 0   ;;  %s1784_s22 = smov 0  }
   0x9   :  { %s1786_s23 = smov 0   ;;  %s1788_s24 = smov 0  }
   0xa LB: > { %2093 = sst [smem:[#allocation7_spill]] %s1678_s17  ;;  %s1302_s25 = sadd.s32 4294967295, %s1706_s24   ;;  %s1706_s24 = sphi %s1788_s24, %s24_s24   ;;  %s1702_s23 = sphi %s1786_s23, %s2124_s23   ;;  %s1698_s22 = sphi %s1784_s22, %s2123_s22   ;;  %s1694_s21 = sphi %s1782_s21, %s2122_s21   ;;  %s1690_s20 = sphi %s1780_s20, %s2121_s20   ;;  %s1686_s19 = sphi %s1778_s19, %s2120_s19   ;;  %s1682_s18 = sphi %s1776_s18, %s2119_s18   ;;  %s1678_s17 = sphi %s1774_s17, %s2118_s17  }
   0xb   : > { %2094 = sst [smem:[#allocation8_spill]] %s1682_s18  ;;  %s1303_s26 = sadd.s32 4294967294, %s1706_s24  }
   0xc   : > { %2095 = sst [smem:[#allocation9_spill]] %s1686_s19  ;;  %s33_s27 = sadd.s32 1, %s1698_s22 }
   0xd   : > { %2096 = sst [smem:[#allocation10_spill]] %s1694_s21  ;;  %p34_p0 = scmp.ge.s32.totalorder %s33_s27, 4 }
   0xe   : > { %2097 = sst [smem:[#allocation11_spill]] %s1698_s22  ;;  %s36_s28 = sadd.s32 1, %s1702_s23 }
   0xf   : > { %2098 = sst [smem:[#allocation12_spill]] %s1702_s23  ;;  %p324_p1 = scmp.ne.s32.totalorder %s1686_s19, %s1682_s18 }
  0x10   : > { %2099 = sst [smem:[#allocation13_spill]] %s1706_s24  ;;  %p325_p2 = scmp.eq.s32.totalorder %s1302_s25, 7 }
  0x11   : > { %s2126_s27 = smov (%p34_p0, %s33_s27), 0  ;;  %s2128_s28 = smov (!%p34_p0, %s36_s28), %s1702_s23 }
  0x12   : > { %2100 = sst [smem:[#allocation14_spill]] %s2126_s27  ;;  %p1823_p3 = por %p325_p2, %p324_p1 }
  0x13   : > { %p330_p4 = scmp.ne.s32.totalorder %s1682_s18, %s1678_s17  ;;  %p38_p5 = scmp.ge.s32.totalorder %s2128_s28, 2 }
  0x14   : > { %s2101_s29 = scalar_select %p1823_p3, 1, 0 }
  0x15   : > { %p331_p6 = scmp.eq.s32.totalorder %s1303_s26, 7  ;;  %p1306_p7 = scmp.ge.s32.totalorder %s1706_s24, 1 }
  0x16   : > { %2102 = sst [smem:[#allocation15_spill]] %s2101_s29  ;;  %p416_p8 = scmp.lt.s32.totalorder %s1706_s24, 9 }
  0x17   : > { %s2130_s28 = smov (%p38_p5, %s2128_s28), 0  ;;  %p1833_p9 = por %p331_p6, %p330_p4 }
  0x18   : > { %2103 = sst [smem:[#allocation16_spill]] %s2130_s28  ;;  %p417_p10 = pnand %p1306_p7, %p416_p8 }
  0x19   : > { %s2104_s30 = scalar_select %p1833_p9, 1, 0 }
  0x1a   : > { %s311_s12 = ssub.s32 %s1702_s23, %s2130_s28  ;;  %s314_s13 = sadd.s32 1, %s1686_s19 }
  0x1b   : > { %2105 = sst [smem:[#allocation17_spill]] %s2104_s30  ;;  %p312_p11 = scmp.eq.s32.totalorder %s311_s12, 0 }
  0x1c   : > { %420 = sbr.rel (%p417_p10) target bundleno = 1555 (0x613), region = 64  ;;  %s2078_s15 = sand.u32 (!%p417_p10), 1, %s1682_s18  }
  0x1d   : > { %s1841_s14 = scalar_select %p312_p11, %s1686_s19, %s314_s13  }
  0x1e   : > { %p485_p12 = scmp.lt.s32.totalorder (!%p417_p10), %s1694_s21, 1  ;;  %s1847_s16 = sshll.u32 (!%p417_p10), %s2078_s15, 3 }
  0x1f   : > { %2106 = sst [smem:[#allocation18_spill]] %s1841_s14  ;;  %p490_p13 = scmp.lt.s32.totalorder (!%p417_p10), %s1690_s20, 3 }
  0x20   : > { %s2107_s0 = sld [smem:[#allocation19_spill]] (!%p417_p10)  ;;  %s484_s11 = scalar_lea.vmem (!%p417_p10), [#allocation4], %s1847_s16 }
  0x21   : > { %s486_s25 = scalar_select %p485_p12, %s1694_s21, 1 }
  0x22   : > { %s1852_s26 = scalar_select %p490_p13, %s1690_s20, 3 }
  0x23   : > { %s1365_s12 = sshll.u32 %s486_s25, 4  ;;  %s2108_s3 = sld [smem:[#allocation20_spill]] }
  0x24   : > { %s1366_s23 = sshll.u32 %s1852_s26, 6  ;;  %s2109_s4 = sld [smem:[#allocation21_spill]] }
  0x25   : > { %s1873_s25 = scalar_lea.vmem %s2068_s5, %s1366_s23  ;;  %s510_s22 = scalar_lea.vmem %s2070_s7, %s1852_s26 }
  0x26   : > { %s1857_s27 = scalar_lea.vmem %s2107_s0, %s1365_s12  ;;  %s507_s12 = scalar_lea.vmem %s2069_s6, %s1852_s26 }
  0x27   : > { %s513_s18 = scalar_lea.vmem %s2071_s8, %s1852_s26  ;;  %s1369_s19 = sshll.u32 %s1852_s26, 4 }
  0x28   : > { %s1891_s21 = scalar_lea.vmem %s2072_s9, %s1369_s19  ;;  %p1318_p0 = scmp.ne.s32.totalorder %s1690_s20, 0 }
  0x29   : > { %s1863_s14 = scalar_lea.vmem %s2108_s3, %s1366_s23 }
  0x2a   : > { %s1868_s17 = scalar_lea.vmem %s2109_s4, %s1366_s23  ;;  %523 = sbr.rel (%p1318_p0) target bundleno = 361 (0x169), region = 68 }
  0x2f   : > { %v524_v0 = vld [vmem:[%s1857_s27] sm:$0xff]  ;;  %v525_v1 = vld [vmem:[%s1857_s27 + $0x8] sm:$0xff]  ;;  %v1708_v10 = vmov 0.0  }
  0x30   : > { %528 = vadd.xlane.f32.xlu0 %v524_v0  ;;  %577 = vst [vmem:[#allocation3] sm:$0xff] %v1708_v10  ;;  %578 = vst [vmem:[#allocation3 + $0x8] sm:$0xff] %v1708_v10  ;;  %v1319_v19 = vld [vmem:[%s2064_s1] ss:$0 sm:$0xff] }
  0x31   : > { %v1320_v23 = vld [vmem:[%s2065_s2] ss:$0 sm:$0xff] }
  0x34   : > { %530 = vadd.xlane.f32.xlu0 %v525_v1 }
  0xb9   : > { %v529_v2 = vpop.xlane.xlu0 %528 }
  0xba   : > { %v533_v3 = vmul.f32 0.0078125, %v529_v2 }
  0xbc   : > { %v535_v4 = vsub.f32 %v524_v0, %v533_v3 }
  0xbd   : > { %v531_v5 = vpop.xlane.xlu0 %530 }
  0xbe   : > { %v534_v6 = vmul.f32 0.0078125, %v531_v5  ;;  %v537_v7 = vmul.f32 %v535_v4, %v535_v4 }
  0xc0   : > { %v536_v8 = vsub.f32 %v525_v1, %v534_v6  ;;  %539 = vadd.xlane.f32.xlu1 %v537_v7 }
  0xc2   : > { %v538_v9 = vmul.f32 %v536_v8, %v536_v8 }
  0xc4   : > { %541 = vadd.xlane.f32.xlu1 %v538_v9 }
 0x149   : > { %v540_v11 = vpop.xlane.xlu1 %539 }
 0x14a   : > { %v543_v12 = vmul.f32 0.0078125, %v540_v11 }
 0x14c   : > { %v545_v13 = vadd.f32 1e-06, %v543_v12 }
 0x14d   : > { %v542_v14 = vpop.xlane.xlu1 %541 }
 0x14e   : > { %1575 = vrsqrt.f32 %v545_v13  ;;  %v544_v15 = vmul.f32 0.0078125, %v542_v14 }
 0x150   : > { %v546_v16 = vadd.f32 1e-06, %v544_v15 }
 0x152   : > { %1577 = vrsqrt.f32 %v546_v16 }
 0x15b   : > { %v1576_v17 = vpop.eup %1575 }
 0x15c   : > { %v549_v18 = vmul.f32 %v1576_v17, %v535_v4 }
 0x15e   : > { %v557_v21 = vmul.f32 %v1319_v19, %v549_v18 }
 0x15f   : > { %v1578_v20 = vpop.eup %1577 }
 0x160   : > { %v550_v22 = vmul.f32 %v1578_v20, %v536_v8  ;;  %v565_v25 = vadd.f32 %v1320_v23, %v557_v21 }
 0x162   : > { %v558_v24 = vmul.f32 %v1319_v19, %v550_v22 }
 0x164   : > { %v566_v26 = vadd.f32 %v1320_v23, %v558_v24 }
 0x166   : > { %v1378_v27 = vpack.c.bf16 %v566_v26, %v565_v25 }
 0x168   : > { %1379 = vst [vmem:[#allocation2] sm:$0xff] %v1378_v27  }
 0x169 PF: > { %v1579_v28 = vld [vmem:[%s1868_s17 + $0x38] sm:$0xff]   ;;  %v1709_v29 = vmov 0.0   ;;  %v1581_v31 = vld [vmem:[%s1868_s17 + $0x30] sm:$0xff]   ;;  %vm1710_vm0 = vmmov 0   ;;  %v1583_v33 = vld [vmem:[%s1868_s17 + $0x28] sm:$0xff]   ;;  %vm925_vm1 = vcmask 261120  }
 0x16a   : > { %1439 = vmatprep.subr.bf16.mxu1 %v1709_v29  ;;  %1419 = vmatprep.subr.bf16.mxu0 %v1709_v29  ;;  %v1580_v30 = vld [vmem:[%s1863_s14 + $0x38] sm:$0xff]   ;;  %v1582_v32 = vld [vmem:[%s1863_s14 + $0x30] sm:$0xff]   ;;  %v1584_v34 = vld [vmem:[%s1863_s14 + $0x28] sm:$0xff]   ;;  %vm975_vm2 = vcmask 130048   ;;  %p1356_p1 = scmp.ne.s32.totalorder %s1690_s20, 3 }
 0x16b   : > { %1440 = vmatpush3.bf16.msra.mxu1 %v1579_v28  ;;  %1455 = vmatprep.mubr.msk.bf16.mxu1 %vm1710_vm0, %v1709_v29  ;;  %v1585_v35 = vld [vmem:[%s1868_s17 + $0x20] sm:$0xff]   ;;  %v1587_v37 = vld [vmem:[%s1868_s17 + $0x18] sm:$0xff]   ;;  %v1589_v39 = vld [vmem:[%s1868_s17 + $0x10] sm:$0xff]  }
 0x16c   : > { %1420 = vmatpush3.bf16.msra.mxu0 %v1580_v30  ;;  %1441 = vmatprep.subr.bf16.mxu1 %v1709_v29  ;;  %v1586_v36 = vld [vmem:[%s1863_s14 + $0x20] sm:$0xff]   ;;  %v1588_v38 = vld [vmem:[%s1863_s14 + $0x18] sm:$0xff]   ;;  %v1590_v40 = vld [vmem:[%s1863_s14 + $0x10] sm:$0xff]  }
 0x16d   : > { %1421 = vmatprep.subr.bf16.mxu0 %v1709_v29  ;;  %1435 = vmatprep.mubr.msk.bf16.mxu0 %vm1710_vm0, %v1709_v29  ;;  %v1591_v41 = vld [vmem:[%s1868_s17 + $0x8] sm:$0xff]   ;;  %v1593_v43 = vld [vmem:[%s1868_s17] sm:$0xff]   ;;  %v1596_v63 = vld [vmem:[%s1873_s25 + $0x38] sm:$0xff]  }
 0x16e   : > { %v1592_v42 = vld [vmem:[%s1863_s14 + $0x8] sm:$0xff]   ;;  %v1594_v44 = vld [vmem:[%s1863_s14] sm:$0xff]   ;;  %v1597_v0 = vld [vmem:[%s1873_s25 + $0x30] sm:$0xff]  }
 0x16f   : > { %1442 = vmatpush3.bf16.msra.mxu1 %v1581_v31  ;;  %v1595_v45 = vld [vmem:[#allocation2] sm:$0xff]   ;;  %v1598_v1 = vld [vmem:[%s1873_s25 + $0x28] sm:$0xff]   ;;  %v1600_v3 = vld [vmem:[%s1873_s25 + $0x18] sm:$0xff]  }
 0x170   : > { %1422 = vmatpush3.bf16.msra.mxu0 %v1582_v32  ;;  %1443 = vmatprep.subr.bf16.mxu1 %v1709_v29  ;;  %v1333_v48 = vld [vmem:[%s510_s22] ss:$0 sm:$0xff]  ;;  %v1601_v4 = vld [vmem:[%s1873_s25 + $0x10] sm:$0xff]   ;;  %v1602_v5 = vld [vmem:[%s1873_s25 + $0x8] sm:$0xff]  }
 0x171   : > { %1423 = vmatprep.subr.bf16.mxu0 %v1709_v29  ;;  %v1323_v58 = vld [vmem:[%s507_s12] ss:$0 sm:$0xff] }
 0x172   : > { %v1599_v2 = vld [vmem:[%s1873_s25 + $0x20] sm:$0xff]  }
 0x173   : > { %1444 = vmatpush3.bf16.msra.mxu1 %v1583_v33  ;;  %v1603_v6 = vld [vmem:[%s1873_s25] sm:$0xff]  }
 0x174   : > { %1424 = vmatpush3.bf16.msra.mxu0 %v1584_v34  ;;  %1445 = vmatprep.subr.bf16.mxu1 %v1709_v29  ;;  %v1342_v27 = vld [vmem:[%s513_s18] ss:$0 sm:$0xff] }
 0x175   : > { %1425 = vmatprep.subr.bf16.mxu0 %v1709_v29 }
 0x177   : > { %1446 = vmatpush3.bf16.msra.mxu1 %v1585_v35 }
 0x178   : > { %1426 = vmatpush3.bf16.msra.mxu0 %v1586_v36  ;;  %1447 = vmatprep.subr.bf16.mxu1 %v1709_v29 }
 0x179   : > { %1427 = vmatprep.subr.bf16.mxu0 %v1709_v29 }
 0x17b   : > { %1448 = vmatpush3.bf16.msra.mxu1 %v1587_v37 }
 0x17c   : > { %1428 = vmatpush3.bf16.msra.mxu0 %v1588_v38  ;;  %1449 = vmatprep.subr.bf16.mxu1 %v1709_v29 }
 0x17d   : > { %1429 = vmatprep.subr.bf16.mxu0 %v1709_v29 }
 0x17f   : > { %1450 = vmatpush3.bf16.msra.mxu1 %v1589_v39 }
 0x180   : > { %1430 = vmatpush3.bf16.msra.mxu0 %v1590_v40  ;;  %1451 = vmatprep.subr.bf16.mxu1 %v1709_v29 }
 0x181   : > { %1431 = vmatprep.subr.bf16.mxu0 %v1709_v29 }
 0x183   : > { %1452 = vmatpush3.bf16.msra.mxu1 %v1591_v41  ;;  %v1604_v41 = vld [vmem:[%s1891_s21 + $0x8] sm:$0xff]  }
 0x184   : > { %1432 = vmatpush3.bf16.msra.mxu0 %v1592_v42  ;;  %1453 = vmatprep.subr.bf16.mxu1 %v1709_v29  ;;  %v1605_v42 = vld [vmem:[%s1891_s21] sm:$0xff]  }
 0x185   : > { %1433 = vmatprep.subr.bf16.mxu0 %v1709_v29 }
 0x187   : > { %1454 = vmatpush3.bf16.msra.mxu1 %v1593_v43 }
 0x188   : > { %1434 = vmatpush3.bf16.msra.mxu0 %v1594_v44  ;;  %1479 = vmatprep.subr.bf16.mxu1 %v1709_v29 }
 0x189   : > { %1459 = vmatprep.subr.bf16.mxu0 %v1709_v29 }
 0x18a   : > { %1456 = vmatmul.mubr.bf16.vlgmr.msra.gmra.mxu1 %v1595_v45 }
 0x18b   : > { %1436 = vmatmul.mubr.bf16.vlgmr.msra.gmra.mxu0 %v1595_v45  ;;  %1481 = vmatprep.mubr.msk.bf16.mxu1 %vm1710_vm0, %v1709_v29 }
 0x18c   : > { %1475 = vmatprep.mubr.msk.bf16.mxu0 %vm1710_vm0, %v1709_v29  ;;  %1460 = vmatpush3.bf16.msra.mxu0 %v1596_v63 }
 0x18d   : > { %1461 = vmatprep.subr.bf16.mxu0 %v1709_v29 }
 0x190   : > { %1462 = vmatpush3.bf16.msra.mxu0 %v1597_v0 }
 0x191   : > { %1463 = vmatprep.subr.bf16.mxu0 %v1709_v29 }
 0x194   : > { %1464 = vmatpush3.bf16.msra.mxu0 %v1598_v1 }
 0x195   : > { %1465 = vmatprep.subr.bf16.mxu0 %v1709_v29 }
 0x198   : > { %1466 = vmatpush3.bf16.msra.mxu0 %v1599_v2 }
 0x199   : > { %1467 = vmatprep.subr.bf16.mxu0 %v1709_v29 }
 0x19c   : > { %1468 = vmatpush3.bf16.msra.mxu0 %v1600_v3 }
 0x19d   : > { %1469 = vmatprep.subr.bf16.mxu0 %v1709_v29 }
 0x1a0   : > { %1470 = vmatpush3.bf16.msra.mxu0 %v1601_v4 }
 0x1a1   : > { %1471 = vmatprep.subr.bf16.mxu0 %v1709_v29 }
 0x1a4   : > { %1472 = vmatpush3.bf16.msra.mxu0 %v1602_v5 }
 0x1a5   : > { %1473 = vmatprep.subr.bf16.mxu0 %v1709_v29 }
 0x1a8   : > { %1474 = vmatpush3.bf16.msra.mxu0 %v1603_v6 }
 0x1ab   : > { %1476 = vmatmul.mubr.bf16.vlgmr.msra.gmra.mxu0 %v1595_v45 }
 0x24a   : > { %v804_v46 = vpop.f32.mrf.mxu1 }
 0x24b   : > { %v692_v47 = vpop.f32.mrf.mxu0  ;;  %v805_v52 = vadd.f32 %v1333_v48, %v804_v46 }
 0x24c   : > { %v1457_v49 = vpop.f32.mrf.mxu1  ;;  %v693_v60 = vadd.f32 %v1323_v58, %v692_v47 }
 0x24d   : > { %v1437_v50 = vpop.f32.mrf.mxu0 }
 0x24e   : > { %v807_v51 = vpop.f32.mrf.mxu1 }
 0x24f   : > { %v808_v53 = vadd.f32 %v1333_v48, %v807_v51  ;;  %v695_v54 = vpop.f32.mrf.mxu0  ;;  %v1044_v48 = vld [vmem:[#allocation3] sm:$0xff] }
 0x250   : > { %v1458_v55 = vpop.f32.mrf.mxu1  ;;  %v696_v61 = vadd.f32 %v1323_v58, %v695_v54 }
 0x251   : > { %v924_v56 = vpack.c.bf16 %v808_v53, %v805_v52  ;;  %v1438_v57 = vpop.f32.mrf.mxu0  ;;  %v1045_v52 = vld [vmem:[#allocation3 + $0x8] sm:$0xff] }
 0x252   : > { %v923_v62 = vpack.c.bf16 %v696_v61, %v693_v60 }
 0x253   : > { %v930_v59 = vsel %vm925_vm1, %v924_v56, 0 }
 0x254   : > { %1480 = vmatpush3.bf16.xpose.msra.mxu1 %v930_v59 }
 0x255   : > { %1485 = vmatprep.subr.bf16.mxu1 %v1709_v29 }
 0x25b   : > { %1482 = vmatmul.mubr.msk.bf16.vlgmr.msra.gmra.mxu1 %vm925_vm1, %v923_v62 }
 0x25c   : > { %1487 = vmatprep.mubr.msk.bf16.mxu1 %vm1710_vm0, %v1709_v29 }
 0x26b   : > { %v916_v25 = vpop.f32.mrf.mxu0 }
 0x26c   : > { %v917_v30 = vadd.f32 %v1342_v27, %v916_v25 }
 0x26d   : > { %v1477_v26 = vpop.f32.mrf.mxu0 }
 0x26f   : > { %v919_v28 = vpop.f32.mrf.mxu0 }
 0x270   : > { %v920_v32 = vadd.f32 %v1342_v27, %v919_v28 }
 0x271   : > { %v1478_v31 = vpop.f32.mrf.mxu0 }
 0x272   : > { %v999_v33 = vpack.c.bf16 %v920_v32, %v917_v30 }
 0x274   : > { %1486 = vmatpush3.bf16.msra.mxu1 %v999_v33 }
 0x275   : > { %1491 = vmatprep.subr.bf16.mxu1 %v1709_v29 }
 0x31b   : > { %v966_v7 = vpop.f32.mrf.mxu1 }
 0x31c   : > { %v973_v8 = vmul.f32 0.17677669, %v966_v7 }
 0x31d   : > { %v1483_v9 = vpop.f32.mrf.mxu1 }
 0x31e   : > { %v976_v10 = vsel %vm975_vm2, %v973_v8, -inf }
 0x31f   : > { %977 = vmax.xlane.f32.xlu0 %v976_v10  ;;  %v969_v11 = vpop.f32.mrf.mxu1 }
 0x320   : > { %v974_v12 = vmul.f32 0.17677669, %v969_v11 }
 0x321   : > { %v1484_v13 = vpop.f32.mrf.mxu1 }
 0x322   : > { %v979_v14 = vsel %vm975_vm2, %v974_v12, -inf }
 0x323   : > { %980 = vmax.xlane.f32.xlu0 %v979_v14 }
 0x3a8   : > { %v978_v15 = vpop.xlane.xlu0 %977 }
 0x3a9   : > { %v982_v16 = vsub.f32 %v973_v8, %v978_v15 }
 0x3ab   : > { %v984_v17 = vmul.f32 1.442695, %v982_v16 }
 0x3ac   : > { %v981_v18 = vpop.xlane.xlu0 %980 }
 0x3ad   : > { %1606 = vpow2.f32 %v984_v17  ;;  %v983_v19 = vsub.f32 %v974_v12, %v981_v18 }
 0x3af   : > { %v986_v20 = vmul.f32 1.442695, %v983_v19 }
 0x3b1   : > { %1608 = vpow2.f32 %v986_v20 }
 0x3ba   : > { %v1607_v21 = vpop.eup %1606 }
 0x3bb   : > { %v988_v22 = vsel %vm975_vm2, %v1607_v21, 0.0 }
 0x3bc   : > { %989 = vadd.xlane.f32.xlu1 %v988_v22 }
 0x3be   : > { %v1609_v23 = vpop.eup %1608 }
 0x3bf   : > { %v991_v24 = vsel %vm975_vm2, %v1609_v23, 0.0 }
 0x3c0   : > { %992 = vadd.xlane.f32.xlu1 %v991_v24 }
 0x445   : > { %v990_v34 = vpop.xlane.xlu1 %989 }
 0x446   : > { %1610 = vrcp.f32 %v990_v34 }
 0x449   : > { %v993_v35 = vpop.xlane.xlu1 %992 }
 0x44a   : > { %1612 = vrcp.f32 %v993_v35 }
 0x453   : > { %v1611_v36 = vpop.eup %1610 }
 0x454   : > { %v996_v39 = vmul.f32 %v1611_v36, %v1607_v21 }
 0x457   : > { %v1613_v37 = vpop.eup %1612 }
 0x458   : > { %v997_v38 = vmul.f32 %v1613_v37, %v1609_v23 }
 0x45a   : > { %v998_v40 = vpack.c.bf16 %v997_v38, %v996_v39 }
 0x45c   : > { %1488 = vmatmul.mubr.msk.bf16.vlgmr.msra.gmra.mxu1 %vm975_vm2, %v998_v40 }
 0x45d   : > { %1495 = vmatprep.mubr.msk.bf16.mxu1 %vm1710_vm0, %v1709_v29  ;;  %1492 = vmatpush3.bf16.msra.mxu1 %v1604_v41 }
 0x45e   : > { %1493 = vmatprep.subr.bf16.mxu1 %v1709_v29 }
 0x461   : > { %1494 = vmatpush3.bf16.msra.mxu1 %v1605_v42 }
 0x51c   : > { %v1037_v43 = vpop.f32.mrf.mxu1 }
 0x51e   : > { %v1489_v44 = vpop.f32.mrf.mxu1 }
 0x520   : > { %v1040_v45 = vpop.f32.mrf.mxu1 }
 0x521   : > { %v1046_v46 = vpack.c.bf16 %v1040_v45, %v1037_v43 }
 0x522   : > { %v1490_v47 = vpop.f32.mrf.mxu1 }
 0x523   : > { %1496 = vmatmul.mubr.msk.bf16.vlgmr.msra.gmra.mxu1 %vm925_vm1, %v1046_v46 }
 0x5e3   : > { %v1100_v49 = vpop.f32.mrf.mxu1 }
 0x5e4   : > { %v1107_v50 = vadd.f32 %v1100_v49, %v1044_v48 }
 0x5e5   : > { %v1497_v51 = vpop.f32.mrf.mxu1 }
 0x5e6   : > { %1109 = vst [vmem:[#allocation3] sm:$0xff] %v1107_v50  ;;  %1114 = sbr.rel (%p1356_p1) target bundleno = 1529 (0x5f9), region = 72 }
 0x5e7   : > { %v1103_v53 = vpop.f32.mrf.mxu1 }
 0x5e8   : > { %v1108_v54 = vadd.f32 %v1103_v53, %v1045_v52 }
 0x5e9   : > { %v1498_v55 = vpop.f32.mrf.mxu1 }
 0x5ea   : > { %1110 = vst [vmem:[#allocation3 + $0x8] sm:$0xff] %v1108_v54 }
 0x5eb   : > { %v1115_v29 = vld [vmem:[%s1857_s27] sm:$0xff]  ;;  %v1116_v56 = vld [vmem:[%s1857_s27 + $0x8] sm:$0xff] }
 0x5ec   : > { %v1357_v60 = vld [vmem:[%s2073_s10] ss:$0 sm:$0xff] }
 0x5ed   : > { %v1117_v57 = vld [vmem:[#allocation3] sm:$0xff] }
 0x5ee   : > { %v1119_v59 = vadd.f32 %v1117_v57, %v1115_v29 }
 0x5f0   : > { %v1128_v62 = vadd.f32 %v1357_v60, %v1119_v59 }
 0x5f1   : > { %v1118_v58 = vld [vmem:[#allocation3 + $0x8] sm:$0xff] }
 0x5f2   : > { %v1120_v61 = vadd.f32 %v1118_v58, %v1116_v56 }
 0x5f4   : > { %v1129_v63 = vadd.f32 %v1357_v60, %v1120_v61 }
 0x5f6   : > { %v1383_v0 = vpack.c.bf16 %v1129_v63, %v1128_v62 }
 0x5f8   : > { %1384 = vst [vmem:[%s484_s11] sm:$0xff] %v1383_v0  }
 0x5f9 PF: > { %s2110_s20 = sld [smem:[#allocation10_spill]]  ;;  %s1154_s30 = sshll.u32 %s484_s11, 4  ;;  %s2008_s30 = int_to_ptr.vmem [resolvable:$true] %s1154_s30 }
 0x5fa   : > { %s2111_s26 = sld [smem:[#allocation8_spill]]  ;;  %s1614_s4 = scalar_lea.vmem %s2008_s30, 128 }
 0x5fb   : > { %s2113_s15 = sld [smem:[#allocation22_spill]]  ;;  %p1615_p2 = scmp.ne.s32.totalorder %s2008_s30, %s1614_s4 }
 0x5fc   : > { %s1711_s23 = smov [#allocation4]  }
 0x5fd   : > { %p1616_p4 = pnand %p1615_p2, %p1823_p3  ;;  %s1618_s17 = sshll.u32 %s1711_s23, 4  ;;  %s1619_s17 = int_to_ptr.vmem [resolvable:$false] %s1618_s17 }
 0x5fe   : > { %s1620_s24 = scalar_lea.vmem %s1619_s17, 256  ;;  %p1621_p6 = scmp.lt.s32.totalorder %s2008_s30, %s1619_s17 }
 0x5ff   : > { %s1374_s13 = sshll.u32 %s2110_s20, 7  ;;  %p1617_p5 = pneg %p1616_p4 }
 0x600   : > { %s2114_s0 = sand.u32 1, %s2111_s26   ;;  %p1622_p7 = scmp.lt.s32.totalorder %s1620_s24, %s1614_s4 }
 0x601   : > { %s2004_s19 = scalar_lea.hbm %s2113_s15, %s1374_s13  ;;  %s2012_s3 = scalar_lea.sflag [#allocation5], %s2114_s0 }
 0x602   : > { %p1623_p8 = por %p1622_p7, %p1621_p6 }
 0x604   : > { %p1624_p10 = pnand %p1623_p8, %p1617_p5 }
 0x606   : > { %1627 = shalt.err (!%p1624_p10)
}
 0x607   : > { %s1628_s16 = scalar_lea.hbm %s2004_s19, 128  ;;  %s1632_s14 = scalar_lea.hbm %s2113_s15, 256 }
 0x608   : > { %p1629_p11 = scmp.ne.s32.totalorder %s2004_s19, %s1628_s16  ;;  %p1633_p0 = scmp.lt.s32.totalorder %s2004_s19, %s2113_s15 }
 0x609   : > { %p1634_p1 = scmp.lt.s32.totalorder %s1632_s14, %s1628_s16 }
 0x60a   : > { %p1630_p12 = pnand %p1629_p11, %p1823_p3 }
 0x60b   : > { %p1635_p2 = por %p1634_p1, %p1633_p0 }
 0x60c   : > { %p1631_p13 = pneg %p1630_p12 }
 0x60e   : > { %p1636_p4 = pnand %p1635_p2, %p1631_p13 }
 0x610   : > { %1639 = shalt.err (!%p1636_p4)
}
 0x611   : > { %s1712_s18 = smov 64   ;;  %s1713_s21 = smov 4  }
 0x612   : > { %1499 = dma.vmem_to_hbm [thread:$0]  (%p1823_p3), %s2008_s30, 128, %s2004_s19, %s2012_s3, %s1712_s18, %s1712_s18, %s1713_s21  }
 0x613 PF: > { %s2115_s20 = sld [smem:[#allocation13_spill]] }
 0x614   : > { %s2116_s26 = sld [smem:[#allocation7_spill]] }
 0x619   : > { %p1505_p5 = scmp.ge.s32.totalorder %s2115_s20, 2 }
 0x61a   : > { %s1169_s27 = sand.u32 1, %s2116_s26  }
 0x61b   : > { %p1502_p6 = pnand %p1505_p5, %p1833_p9  ;;  %s1170_s22 = scalar_lea.sflag [#allocation5], %s1169_s27 }
 0x61d   : > { %p1503_p7 = pneg %p1502_p6 }
 0x61f   : > { %1673 = dma.done.wait (%p1503_p7), %s1170_s22, 128  }
 0x620   : > { %1675 = vsyncadd (%p1503_p7), %s1170_s22, 4294967168  ;;  %s24_s24 = sadd.s32 1, %s2115_s20   ;;  %s2118_s17 = sld [smem:[#allocation8_spill]] }
 0x621   : > { %p21_p8 = scmp.ge.s32.totalorder %s24_s24, 10   ;;  %s2119_s18 = sld [smem:[#allocation9_spill]] }
 0x622   : > { %s2120_s19 = sld [smem:[#allocation18_spill]] }
 0x623   : > { %s2121_s20 = sld [smem:[#allocation11_spill]]  ;;  %23 = sbr.rel (!%p21_p8) target bundleno = 10 (0xa), region = 128 }
 0x624   : > { %s2122_s21 = sld [smem:[#allocation12_spill]] }
 0x625   : > { %s2123_s22 = sld [smem:[#allocation14_spill]] }
 0x626   : > { %s2124_s23 = sld [smem:[#allocation16_spill]] }
 0x628   :  { %1175 = vsyncpa [#allocation5], 1 }
 0x629   :  { %1177 = vsyncpa [#allocation5 + $0x1], 1 }

</bundles_post_ra>
